<compile_context>
chip_gen: v7x
topology: tpu7x:2x2x1
jax: 0.10.0
libtpu: 0.0.40
codegen_flags: <defaults>
</compile_context>

<pallas_src>
import functools

import jax
import jax.numpy as jnp
from jax.experimental import pallas as pl
from jax.experimental.pallas import tpu as pltpu


SUB = 128  # in-kernel sub-chunk width (batch columns); multiple of the 128-lane vreg width


def mlp_kernel(x_ref, w1_ref, b1_ref, w2_ref, b2_ref, w3_ref, b3_ref,
               w4_ref, b4_ref, o_ref, *, sub, ew_dtype):
    """Feature-major forward pass of the 7->128->64->32->1 MLP on one batch tile.

    x_ref : (7, tb)  f32         o_ref : (1, tb)  f32
    w1_ref: (128, 7) f32         b1_ref: (128, 1) ew_dtype
    w2_ref: (64, 128) bf16       b2_ref: (64, 1)  ew_dtype
    w3_ref: (32, 64)  bf16       b3_ref: (32, 1)  ew_dtype
    w4_ref: (32, 1)   f32        b4_ref: (1, 1)   f32
    """
    tb = o_ref.shape[-1]
    n_sub = tb // sub

    # Static Python loop == fully unrolled (n_sub <= 8); all lane offsets are
    # compile-time constants (same codegen as lax.fori_loop(..., unroll=True)
    # at this trip count, with zero dynamic-lane-slice lowering risk).
    for j in range(n_sub):
        c0 = j * sub
        x = x_ref[:, c0:c0 + sub]                                   # (7, sub) f32

        # Layer 1 (7 -> 128): K=7 keeps the MXU essentially idle, so f32
        # operands are free and preserve input-feature precision.
        h = jnp.dot(w1_ref[...], x, preferred_element_type=jnp.float32)
        h = jnp.maximum(h.astype(ew_dtype) + b1_ref[...], 0).astype(jnp.bfloat16)

        # Layers 2-3: bf16 MXU operands, f32 accumulation; bias/ReLU in ew_dtype.
        h = jnp.dot(w2_ref[...], h, preferred_element_type=jnp.float32)
        h = jnp.maximum(h.astype(ew_dtype) + b2_ref[...], 0).astype(jnp.bfloat16)

        h = jnp.dot(w3_ref[...], h, preferred_element_type=jnp.float32)
        h = jnp.maximum(h.astype(ew_dtype) + b3_ref[...], 0).astype(jnp.float32)

        # Layer 4 (32 -> 1): VPU multiply + sublane reduce (XLU slot) yields a
        # lane-dense (1, sub) row directly -- no N=1 MXU matmul, no transpose.
        y = jnp.sum(h * w4_ref[...], axis=0, keepdims=True) + b4_ref[...]
        o_ref[:, c0:c0 + sub] = y.astype(o_ref.dtype)


def _elementwise_dtype():
    """bf16 bias/ReLU only on chips with a bf16 VPU (v6e / v7x); f32 otherwise."""
    try:
        kind = jax.devices()[0].device_kind.lower()
    except Exception:
        return jnp.float32
    return jnp.bfloat16 if ("v6" in kind or "v7" in kind) else jnp.float32


def _pick_batch_tile(batch, tb, sub):
    """Round tb to a multiple of `sub` and cap it so the 1-D grid gets at least
    two steps whenever the batch allows it (keeps both v7x TensorCores busy)."""
    tb = max(sub, (tb // sub) * sub)
    half = sub * pl.cdiv(pl.cdiv(batch, 2), sub)   # smallest sub-multiple covering B/2
    return max(sub, min(tb, half))


def calories_model_forward(x, params, *, tb=1024, sub=SUB, ew_dtype=None):
    """x: (B, 7) float32. params: w{1..4}: (in, out) f32, b{1..4}: (1, out) f32.

    Returns (B, 1) float32, matching nn.Sequential(Linear(7,128), ReLU, ...,
    Linear(32,1)) up to bf16 MXU-operand rounding on the two wide inner layers.
    """
    B, F = x.shape
    assert F == 7, f"expected 7 input features, got {F}"
    if ew_dtype is None:
        ew_dtype = _elementwise_dtype()

    tb = _pick_batch_tile(B, tb, sub)
    n_tiles = pl.cdiv(B, tb)
    b_pad = n_tiles * tb

    # Feature-major input: batch on lanes.  (Transpose/pad are tiny XLA-side ops.)
    xt = x.astype(jnp.float32).T                                  # (7, B)
    if b_pad != B:
        xt = jnp.pad(xt, ((0, 0), (0, b_pad - B)))

    w1t = params["w1"].T.astype(jnp.float32)                      # (128, 7)
    w2t = params["w2"].T.astype(jnp.bfloat16)                     # (64, 128)
    w3t = params["w3"].T.astype(jnp.bfloat16)                     # (32, 64)
    b1c = params["b1"].reshape(-1, 1).astype(ew_dtype)            # (128, 1)
    b2c = params["b2"].reshape(-1, 1).astype(ew_dtype)            # (64, 1)
    b3c = params["b3"].reshape(-1, 1).astype(ew_dtype)            # (32, 1)
    w4c = params["w4"].reshape(-1, 1).astype(jnp.float32)         # (32, 1)
    b4c = params["b4"].reshape(1, 1).astype(jnp.float32)          # (1, 1)

    def rep(arr):
        # Full array at a constant block index: DMA'd once on the first grid
        # step, then VMEM-resident for the remaining steps.
        return pl.BlockSpec(arr.shape, lambda i: (0, 0))

    out = pl.pallas_call(
        functools.partial(mlp_kernel, sub=sub, ew_dtype=ew_dtype),
        out_shape=jax.ShapeDtypeStruct((1, b_pad), jnp.float32),
        grid_spec=pltpu.PrefetchScalarGridSpec(
            num_scalar_prefetch=0,
            grid=(n_tiles,),
            in_specs=[
                pl.BlockSpec((F, tb), lambda i: (0, i)),          # x tile over batch lanes
                rep(w1t), rep(b1c),
                rep(w2t), rep(b2c),
                rep(w3t), rep(b3c),
                rep(w4c), rep(b4c),
            ],
            out_specs=pl.BlockSpec((1, tb), lambda i: (0, i)),    # lane-dense output row
        ),
        compiler_params=pltpu.CompilerParams(
            dimension_semantics=("parallel",)),
    )(xt, w1t, b1c, w2t, b2c, w3t, b3c, w4c, b4c)

    return out[0, :B].reshape(B, 1)


def init_params(key):
    """Deterministic init mimicking nn.Linear defaults (U[-1/sqrt(fan_in), +])."""
    dims = [(7, 128), (128, 64), (64, 32), (32, 1)]
    params = {}
    for idx, (fan_in, fan_out) in enumerate(dims, start=1):
        key, kw, kb = jax.random.split(key, 3)
        bound = 1.0 / jnp.sqrt(float(fan_in))
        params[f"w{idx}"] = jax.random.uniform(
            kw, (fan_in, fan_out), jnp.float32, -bound, bound)
        params[f"b{idx}"] = jax.random.uniform(
            kb, (1, fan_out), jnp.float32, -bound, bound)
    return params


def reference_forward(x, params, *, mixed=False):
    """Pure-JAX reference.  mixed=True mirrors the kernel's MXU precision
    (f32 layer 1, bf16 operands with f32 accumulation for layers 2-3)."""
    h = x.astype(jnp.float32)
    for idx in range(1, 4):
        w = params[f"w{idx}"]
        if mixed and idx > 1:
            h = jnp.dot(h.astype(jnp.bfloat16), w.astype(jnp.bfloat16),
                        preferred_element_type=jnp.float32)
        else:
            h = jnp.dot(h, w, preferred_element_type=jnp.float32)
        h = jnp.maximum(h + params[f"b{idx}"], 0.0)
    return jnp.dot(h, params["w4"], preferred_element_type=jnp.float32) + params["b4"]


if __name__ == "__main__":
    key = jax.random.PRNGKey(0)
    kx, kx2, kp = jax.random.split(key, 3)
    params = init_params(kp)

    # Small batch: pads up to a single 128-column tile internally.
    B = 32
    x = jax.random.normal(kx, (B, 7), jnp.float32)
    out = jax.block_until_ready(calories_model_forward(x, params))
    assert out.shape == (B, 1), out.shape
    ref_mixed = reference_forward(x, params, mixed=True)
    ref_f32 = reference_forward(x, params, mixed=False)
    assert jnp.allclose(out, ref_mixed, atol=2e-2, rtol=2e-2), (out, ref_mixed)
    assert jnp.allclose(out, ref_f32, atol=5e-2, rtol=5e-2), (out, ref_f32)

    # Non-multiple batch: exercises padding, a 2-step grid and multi-sub-chunk tiles.
    B2 = 520
    x2 = jax.random.normal(kx2, (B2, 7), jnp.float32)
    out2 = jax.block_until_ready(calories_model_forward(x2, params))
    assert out2.shape == (B2, 1), out2.shape
    ref2 = reference_forward(x2, params, mixed=True)
    assert jnp.allclose(out2, ref2, atol=2e-2, rtol=2e-2), (out2, ref2)

    print("KERNEL_OK")
</pallas_src>

<mosaic_0001>
module attributes {stable_mosaic.version = 11 : i64} {
  func.func @mlp_kernel(%arg0: i32, %arg1: memref<7x128xf32, #tpu.memory_space<vmem>>, %arg2: memref<128x7xf32, #tpu.memory_space<vmem>>, %arg3: memref<128x1xf32, #tpu.memory_space<vmem>>, %arg4: memref<64x128xbf16, #tpu.memory_space<vmem>>, %arg5: memref<64x1xf32, #tpu.memory_space<vmem>>, %arg6: memref<32x64xbf16, #tpu.memory_space<vmem>>, %arg7: memref<32x1xf32, #tpu.memory_space<vmem>>, %arg8: memref<32x1xf32, #tpu.memory_space<vmem>>, %arg9: memref<1x1xf32, #tpu.memory_space<vmem>>, %arg10: memref<1x128xf32, #tpu.memory_space<vmem>>) attributes {dimension_semantics = [#tpu.dimension_semantics<parallel>], iteration_bounds = array<i64: 1>, scalar_prefetch = 0 : i64, scratch_operands = 0 : i64, tpu.core_type = #tpu.core_type<tc>, window_params = [{transform_indices = @transform_0, window_bounds = array<i64: 7, 128>}, {pipeline_mode = #tpu.pipeline_mode<synchronous>, transform_indices = @transform_1, window_bounds = array<i64: 128, 7>}, {pipeline_mode = #tpu.pipeline_mode<synchronous>, transform_indices = @transform_2, window_bounds = array<i64: 128, 1>}, {pipeline_mode = #tpu.pipeline_mode<synchronous>, transform_indices = @transform_3, window_bounds = array<i64: 64, 128>}, {pipeline_mode = #tpu.pipeline_mode<synchronous>, transform_indices = @transform_4, window_bounds = array<i64: 64, 1>}, {pipeline_mode = #tpu.pipeline_mode<synchronous>, transform_indices = @transform_5, window_bounds = array<i64: 32, 64>}, {pipeline_mode = #tpu.pipeline_mode<synchronous>, transform_indices = @transform_6, window_bounds = array<i64: 32, 1>}, {pipeline_mode = #tpu.pipeline_mode<synchronous>, transform_indices = @transform_7, window_bounds = array<i64: 32, 1>}, {pipeline_mode = #tpu.pipeline_mode<synchronous>, transform_indices = @transform_8, window_bounds = array<i64: 1, 1>}, {transform_indices = @transform_9, window_bounds = array<i64: 1, 128>}]} {
    %c0 = arith.constant 0 : index
    %c0_0 = arith.constant 0 : index
    %0 = vector.load %arg1[%c0, %c0_0] : memref<7x128xf32, #tpu.memory_space<vmem>>, vector<7x128xf32>
    %c0_1 = arith.constant 0 : index
    %c0_2 = arith.constant 0 : index
    %1 = vector.load %arg2[%c0_1, %c0_2] : memref<128x7xf32, #tpu.memory_space<vmem>>, vector<128x7xf32>
    %cst = arith.constant dense<0.000000e+00> : vector<128x128xf32>
    %2 = tpu.matmul %1, %0, %cst {dimension_numbers = #tpu.dot_dimension_numbers<[1], [0], [0], [1], [0, 0, 1, 1], [], []>} : vector<128x7xf32>, vector<7x128xf32>, vector<128x128xf32> -> vector<128x128xf32>
    %c0_3 = arith.constant 0 : index
    %c0_4 = arith.constant 0 : index
    %3 = vector.load %arg3[%c0_3, %c0_4] : memref<128x1xf32, #tpu.memory_space<vmem>>, vector<128x1xf32>
    %4 = vector.broadcast %3 : vector<128x1xf32> to vector<128x128xf32>
    %5 = arith.addf %2, %4 : vector<128x128xf32>
    %cst_5 = arith.constant 0.000000e+00 : f32
    %6 = vector.broadcast %cst_5 : f32 to vector<128x128xf32>
    %7 = arith.maximumf %5, %6 : vector<128x128xf32>
    %8 = arith.truncf %7 : vector<128x128xf32> to vector<128x128xbf16>
    %c0_6 = arith.constant 0 : index
    %c0_7 = arith.constant 0 : index
    %9 = vector.load %arg4[%c0_6, %c0_7] : memref<64x128xbf16, #tpu.memory_space<vmem>>, vector<64x128xbf16>
    %cst_8 = arith.constant dense<0.000000e+00> : vector<64x128xf32>
    %10 = tpu.matmul %9, %8, %cst_8 {dimension_numbers = #tpu.dot_dimension_numbers<[1], [0], [0], [1], [0, 0, 1, 1], [], []>} : vector<64x128xbf16>, vector<128x128xbf16>, vector<64x128xf32> -> vector<64x128xf32>
    %c0_9 = arith.constant 0 : index
    %c0_10 = arith.constant 0 : index
    %11 = vector.load %arg5[%c0_9, %c0_10] : memref<64x1xf32, #tpu.memory_space<vmem>>, vector<64x1xf32>
    %12 = vector.broadcast %11 : vector<64x1xf32> to vector<64x128xf32>
    %13 = arith.addf %10, %12 : vector<64x128xf32>
    %cst_11 = arith.constant 0.000000e+00 : f32
    %14 = vector.broadcast %cst_11 : f32 to vector<64x128xf32>
    %15 = arith.maximumf %13, %14 : vector<64x128xf32>
    %16 = arith.truncf %15 : vector<64x128xf32> to vector<64x128xbf16>
    %c0_12 = arith.constant 0 : index
    %c0_13 = arith.constant 0 : index
    %17 = vector.load %arg6[%c0_12, %c0_13] : memref<32x64xbf16, #tpu.memory_space<vmem>>, vector<32x64xbf16>
    %cst_14 = arith.constant dense<0.000000e+00> : vector<32x128xf32>
    %18 = tpu.matmul %17, %16, %cst_14 {dimension_numbers = #tpu.dot_dimension_numbers<[1], [0], [0], [1], [0, 0, 1, 1], [], []>} : vector<32x64xbf16>, vector<64x128xbf16>, vector<32x128xf32> -> vector<32x128xf32>
    %c0_15 = arith.constant 0 : index
    %c0_16 = arith.constant 0 : index
    %19 = vector.load %arg7[%c0_15, %c0_16] : memref<32x1xf32, #tpu.memory_space<vmem>>, vector<32x1xf32>
    %20 = vector.broadcast %19 : vector<32x1xf32> to vector<32x128xf32>
    %21 = arith.addf %18, %20 : vector<32x128xf32>
    %cst_17 = arith.constant 0.000000e+00 : f32
    %22 = vector.broadcast %cst_17 : f32 to vector<32x128xf32>
    %23 = arith.maximumf %21, %22 : vector<32x128xf32>
    %c0_18 = arith.constant 0 : index
    %c0_19 = arith.constant 0 : index
    %24 = vector.load %arg8[%c0_18, %c0_19] : memref<32x1xf32, #tpu.memory_space<vmem>>, vector<32x1xf32>
    %25 = vector.broadcast %24 : vector<32x1xf32> to vector<32x128xf32>
    %26 = arith.mulf %23, %25 : vector<32x128xf32>
    %cst_20 = arith.constant dense<0.000000e+00> : vector<128xf32>
    %27 = vector.multi_reduction <add>, %26, %cst_20 [0] : vector<32x128xf32> to vector<128xf32>
    %28 = vector.shape_cast %27 : vector<128xf32> to vector<1x128xf32>
    %c0_21 = arith.constant 0 : index
    %c0_22 = arith.constant 0 : index
    %29 = vector.load %arg9[%c0_21, %c0_22] : memref<1x1xf32, #tpu.memory_space<vmem>>, vector<1x1xf32>
    %30 = vector.broadcast %29 : vector<1x1xf32> to vector<1x128xf32>
    %31 = arith.addf %28, %30 : vector<1x128xf32>
    %c0_23 = arith.constant 0 : index
    %c0_24 = arith.constant 0 : index
    %32 = vector.load %arg10[%c0_23, %c0_24] : memref<1x128xf32, #tpu.memory_space<vmem>>, vector<1x128xf32>
    tpu.vector_store %arg10[%c0_23, %c0_24], %31 {strides = array<i32>} : memref<1x128xf32, #tpu.memory_space<vmem>>, vector<1x128xf32>,
    return
  }
  func.func @transform_0(%arg0: i32) -> (i32, i32) {
    %c0_i32 = arith.constant 0 : i32
    %c0_i32_0 = arith.constant 0 : i32
    return %c0_i32, %arg0 : i32, i32
  }
  func.func @transform_1(%arg0: i32) -> (i32, i32) {
    %c0_i32 = arith.constant 0 : i32
    %c0_i32_0 = arith.constant 0 : i32
    %c0_i32_1 = arith.constant 0 : i32
    return %c0_i32, %c0_i32_0 : i32, i32
  }
  func.func @transform_2(%arg0: i32) -> (i32, i32) {
    %c0_i32 = arith.constant 0 : i32
    %c0_i32_0 = arith.constant 0 : i32
    %c0_i32_1 = arith.constant 0 : i32
    return %c0_i32, %c0_i32_0 : i32, i32
  }
  func.func @transform_3(%arg0: i32) -> (i32, i32) {
    %c0_i32 = arith.constant 0 : i32
    %c0_i32_0 = arith.constant 0 : i32
    %c0_i32_1 = arith.constant 0 : i32
    return %c0_i32, %c0_i32_0 : i32, i32
  }
  func.func @transform_4(%arg0: i32) -> (i32, i32) {
    %c0_i32 = arith.constant 0 : i32
    %c0_i32_0 = arith.constant 0 : i32
    %c0_i32_1 = arith.constant 0 : i32
    return %c0_i32, %c0_i32_0 : i32, i32
  }
  func.func @transform_5(%arg0: i32) -> (i32, i32) {
    %c0_i32 = arith.constant 0 : i32
    %c0_i32_0 = arith.constant 0 : i32
    %c0_i32_1 = arith.constant 0 : i32
    return %c0_i32, %c0_i32_0 : i32, i32
  }
  func.func @transform_6(%arg0: i32) -> (i32, i32) {
    %c0_i32 = arith.constant 0 : i32
    %c0_i32_0 = arith.constant 0 : i32
    %c0_i32_1 = arith.constant 0 : i32
    return %c0_i32, %c0_i32_0 : i32, i32
  }
  func.func @transform_7(%arg0: i32) -> (i32, i32) {
    %c0_i32 = arith.constant 0 : i32
    %c0_i32_0 = arith.constant 0 : i32
    %c0_i32_1 = arith.constant 0 : i32
    return %c0_i32, %c0_i32_0 : i32, i32
  }
  func.func @transform_8(%arg0: i32) -> (i32, i32) {
    %c0_i32 = arith.constant 0 : i32
    %c0_i32_0 = arith.constant 0 : i32
    %c0_i32_1 = arith.constant 0 : i32
    return %c0_i32, %c0_i32_0 : i32, i32
  }
  func.func @transform_9(%arg0: i32) -> (i32, i32) {
    %c0_i32 = arith.constant 0 : i32
    %c0_i32_0 = arith.constant 0 : i32
    return %c0_i32, %arg0 : i32, i32
  }
}

</mosaic_0001>

<bundles_post_ra>
// kernel: tpu_custom_call.1
= control target key start
LH: loop header
LB: loop body
LE: loop exit
PB: predicated region body
PF: predicated region fallthrough
CT: control target
= control target key end

     0   :  { %s1095_s0 = inlined_call_operand.vmem [shape: f32[7,128], index: 0, kind: input, shape index: {}]   ;;  %s1096_s1 = inlined_call_operand.vmem [shape: f32[128,7], index: 1, kind: input, shape index: {}]   ;;  %s1097_s2 = inlined_call_operand.vmem [shape: f32[128,1], index: 2, kind: input, shape index: {}]   ;;  %s1098_s3 = inlined_call_operand.vmem [shape: bf16[64,128], index: 3, kind: input, shape index: {}]   ;;  %s1099_s4 = inlined_call_operand.vmem [shape: f32[64,1], index: 4, kind: input, shape index: {}]   ;;  %s1100_s5 = inlined_call_operand.vmem [shape: bf16[32,64], index: 5, kind: input, shape index: {}]   ;;  %s1101_s6 = inlined_call_operand.vmem [shape: f32[32,1], index: 6, kind: input, shape index: {}]   ;;  %s1102_s7 = inlined_call_operand.vmem [shape: f32[32,1], index: 7, kind: input, shape index: {}]   ;;  %s1103_s8 = inlined_call_operand.<no memory space> [shape: f32[1,1], index: 8, kind: input, shape index: {}]   ;;  %s1104_s9 = inlined_call_operand.hbm [shape: f32[1,128], index: 9, kind: output, shape index: {}]  }
   0x1   :  { %v14_v0 = vstv %s1103_s8 }
   0x2   :  { %15 = vst [vmem:[#allocation2] sm:$0x1] %v14_v0 }
   0x3   :  { %v36_v1 = vld [vmem:[%s1095_s0] sm:$0x7f]  ;;  %vm198_vm0 = vcmask 1046528   ;;  %vm149_vm1 = vcmask 56320   ;;  %v38_v3 = vld [vmem:[%s1096_s1 + $0x8] sm:$0xff]  ;;  %v39_v4 = vld [vmem:[%s1096_s1 + $0x10] sm:$0xff] }
   0x4   :  { %v37_v2 = vld [vmem:[%s1096_s1] sm:$0xff]  ;;  %749 = vmatprep.subr.msk.mxu0 %vm198_vm0, %v36_v1  ;;  %v845_v5 = vmov 0   ;;  %v40_v7 = vld [vmem:[%s1096_s1 + $0x18] sm:$0xff]  ;;  %v54_v9 = vld [vmem:[%s1097_s2 + $0x8] sm:$0xff] }
   0x5   :  { %751 = vmatprep.mubr.msk.f32.mxu0 %vm149_vm1, %v37_v2  ;;  %750 = vmatpush3.msk.msra.mxu0 %vm198_vm0, %v36_v1  ;;  %v53_v6 = vld [vmem:[%s1097_s2] sm:$0xff]  ;;  %v55_v10 = vld [vmem:[%s1097_s2 + $0x10] sm:$0xff]  ;;  %v56_v11 = vld [vmem:[%s1097_s2 + $0x18] sm:$0xff] }
   0x6   :  { %813 = vset.pattern.permute.xlu0 %v845_v5  ;;  %752 = vmatmul.mubr.msk.f32.vlgmr.msra.gmra.mrb[0].mxu0 %vm149_vm1, %v38_v3  ;;  %v41_v8 = vld [vmem:[%s1096_s1 + $0x20] sm:$0xff]  ;;  %v42_v12 = vld [vmem:[%s1096_s1 + $0x28] sm:$0xff]  ;;  %v43_v13 = vld [vmem:[%s1096_s1 + $0x30] sm:$0xff] }
   0x7   :  { %814 = vset.pattern.permute.xlu1 %v845_v5  ;;  %754 = vmatprep.mubr.msk.f32.mxu0 %vm149_vm1, %v39_v4  ;;  %v57_v14 = vld [vmem:[%s1097_s2 + $0x20] sm:$0xff]  ;;  %v58_v15 = vld [vmem:[%s1097_s2 + $0x28] sm:$0xff]  ;;  %v44_v16 = vld [vmem:[%s1096_s1 + $0x38] sm:$0xff] }
   0x8   :  { %71 = vperm.xlu0 %813, %v53_v6   ;;  %81 = vperm.xlu1 %814, %v55_v10   ;;  %v45_v17 = vld [vmem:[%s1096_s1 + $0x40] sm:$0xff]  ;;  %v59_v18 = vld [vmem:[%s1097_s2 + $0x30] sm:$0xff]  ;;  %v46_v19 = vld [vmem:[%s1096_s1 + $0x48] sm:$0xff] }
   0x9   :  { %v60_v20 = vld [vmem:[%s1097_s2 + $0x38] sm:$0xff]  ;;  %v47_v21 = vld [vmem:[%s1096_s1 + $0x50] sm:$0xff]  ;;  %v61_v22 = vld [vmem:[%s1097_s2 + $0x40] sm:$0xff] }
   0xa   :  { %755 = vmatmul.mubr.msk.f32.gmra.mrb[2].mxu0 %vm149_vm1, %v40_v7  ;;  %v62_v23 = vld [vmem:[%s1097_s2 + $0x48] sm:$0xff]  ;;  %v48_v24 = vld [vmem:[%s1096_s1 + $0x58] sm:$0xff] }
   0xb   :  { %757 = vmatprep.mubr.msk.f32.mxu0 %vm149_vm1, %v41_v8 }
   0xc   :  { %76 = vperm.xlu0 %813, %v54_v9   ;;  %86 = vperm.xlu1 %814, %v56_v11  }
   0xe   :  { %758 = vmatmul.mubr.msk.f32.gmra.mrb[4].mxu0 %vm149_vm1, %v42_v12 }
   0xf   :  { %760 = vmatprep.mubr.msk.f32.mxu0 %vm149_vm1, %v43_v13 }
  0x10   :  { %91 = vperm.xlu0 %813, %v57_v14   ;;  %96 = vperm.xlu1 %814, %v58_v15  }
  0x12   :  { %761 = vmatmul.mubr.msk.f32.gmra.mrb[6].mxu0 %vm149_vm1, %v44_v16 }
  0x13   :  { %763 = vmatprep.mubr.msk.f32.mxu0 %vm149_vm1, %v45_v17 }
  0x14   :  { %101 = vperm.xlu0 %813, %v59_v18   ;;  %106 = vperm.xlu1 %814, %v60_v20  }
  0x16   :  { %764 = vmatmul.mubr.msk.f32.gmra.mrb[8].mxu0 %vm149_vm1, %v46_v19 }
  0x17   :  { %766 = vmatprep.mubr.msk.f32.mxu0 %vm149_vm1, %v47_v21 }
  0x18   :  { %111 = vperm.xlu0 %813, %v61_v22  }
  0x19   :  { %16 = vsyncpa [#allocation4], 0  ;;  %v49_v25 = vld [vmem:[%s1096_s1 + $0x60] sm:$0xff]  ;;  %v63_v26 = vld [vmem:[%s1097_s2 + $0x50] sm:$0xff]  ;;  %116 = vperm.xlu1 %814, %v62_v23   ;;  %vm566_vm2 = vcmask 523264  }
  0x1a   :  { %767 = vmatmul.mubr.msk.f32.gmra.mrb[10].mxu0 %vm149_vm1, %v48_v24  ;;  %v64_v27 = vld [vmem:[%s1097_s2 + $0x58] sm:$0xff]  ;;  %v50_v28 = vld [vmem:[%s1096_s1 + $0x68] sm:$0xff]  ;;  %v51_v29 = vld [vmem:[%s1096_s1 + $0x70] sm:$0xff] }
  0x1b   :  { %769 = vmatprep.mubr.msk.f32.mxu0 %vm149_vm1, %v49_v25  ;;  %v65_v30 = vld [vmem:[%s1097_s2 + $0x60] sm:$0xff]  ;;  %v66_v31 = vld [vmem:[%s1097_s2 + $0x68] sm:$0xff]  ;;  %v52_v32 = vld [vmem:[%s1096_s1 + $0x78] sm:$0xff] }
  0x1c   :  { %121 = vperm.xlu0 %813, %v63_v26   ;;  %v67_v33 = vld [vmem:[%s1097_s2 + $0x70] sm:$0xff]  ;;  %v68_v34 = vld [vmem:[%s1097_s2 + $0x78] sm:$0xff]  ;;  %v379_v35 = vld [vmem:[%s1099_s4] sm:$0xff] }
  0x1d   :  { %126 = vperm.xlu1 %814, %v64_v27   ;;  %v380_v36 = vld [vmem:[%s1099_s4 + $0x8] sm:$0xff]  ;;  %v381_v37 = vld [vmem:[%s1099_s4 + $0x10] sm:$0xff]  ;;  %v382_v38 = vld [vmem:[%s1099_s4 + $0x18] sm:$0xff] }
  0x1e   :  { %770 = vmatmul.mubr.msk.f32.gmra.mrb[12].mxu0 %vm149_vm1, %v50_v28  ;;  %v383_v39 = vld [vmem:[%s1099_s4 + $0x20] sm:$0xff]  ;;  %v384_v40 = vld [vmem:[%s1099_s4 + $0x28] sm:$0xff]  ;;  %v385_v41 = vld [vmem:[%s1099_s4 + $0x30] sm:$0xff] }
  0x1f   :  { %772 = vmatprep.mubr.msk.f32.mxu0 %vm149_vm1, %v51_v29  ;;  %v386_v42 = vld [vmem:[%s1099_s4 + $0x38] sm:$0xff]  ;;  %v532_v43 = vld [vmem:[%s1101_s6] sm:$0xff]  ;;  %v533_v44 = vld [vmem:[%s1101_s6 + $0x8] sm:$0xff] }
  0x20   :  { %131 = vperm.xlu0 %813, %v65_v30   ;;  %v534_v45 = vld [vmem:[%s1101_s6 + $0x10] sm:$0xff]  ;;  %v535_v46 = vld [vmem:[%s1101_s6 + $0x18] sm:$0xff]  ;;  %v626_v47 = vld [vmem:[%s1102_s7] sm:$0xff] }
  0x21   :  { %136 = vperm.xlu1 %814, %v66_v31   ;;  %v627_v48 = vld [vmem:[%s1102_s7 + $0x8] sm:$0xff]  ;;  %v628_v49 = vld [vmem:[%s1102_s7 + $0x10] sm:$0xff]  ;;  %v629_v50 = vld [vmem:[%s1102_s7 + $0x18] sm:$0xff] }
  0x22   :  { %773 = vmatmul.mubr.msk.f32.gmra.mrb[14].mxu0 %vm149_vm1, %v52_v32  ;;  %v663_v51 = vld [vmem:[#allocation2] sm:$0x1] }
  0x23   :  { %v815_v52 = vld [vmem:[%s1098_s3] sm:$0xff]  }
  0x24   :  { %141 = vperm.xlu0 %813, %v67_v33   ;;  %791 = vmatprep.mubr.bf16.mxu1 %v815_v52 }
  0x25   :  { %146 = vperm.xlu1 %814, %v68_v34  }
  0x28   :  { %389 = vperm.xlu0 %813, %v379_v35  }
  0x29   :  { %394 = vperm.xlu1 %814, %v380_v36  }
  0x2c   :  { %399 = vperm.xlu0 %813, %v381_v37  }
  0x2d   :  { %404 = vperm.xlu1 %814, %v382_v38  }
  0x30   :  { %409 = vperm.xlu0 %813, %v383_v39  }
  0x31   :  { %414 = vperm.xlu1 %814, %v384_v40  }
  0x34   :  { %419 = vperm.xlu0 %813, %v385_v41  }
  0x35   :  { %424 = vperm.xlu1 %814, %v386_v42  }
  0x38   :  { %538 = vperm.xlu0 %813, %v532_v43  }
  0x39   :  { %543 = vperm.xlu1 %814, %v533_v44  }
  0x3c   :  { %548 = vperm.xlu0 %813, %v534_v45  }
  0x3d   :  { %553 = vperm.xlu1 %814, %v535_v46  }
  0x40   :  { %632 = vperm.xlu0 %813, %v626_v47  }
  0x41   :  { %637 = vperm.xlu1 %814, %v627_v48  }
  0x44   :  { %642 = vperm.xlu0 %813, %v628_v49  }
  0x45   :  { %647 = vperm.xlu1 %814, %v629_v50  }
  0x48   :  { %666 = vperm.xlu0 %813, %v663_v51  }
  0x87   :  { %v82_v53 = vpop.permute.xlu1 %81  ;;  %v72_v54 = vpop.permute.xlu0 %71 }
  0x8b   :  { %v87_v55 = vpop.permute.xlu1 %86  ;;  %v77_v56 = vpop.permute.xlu0 %76 }
  0x8f   :  { %v97_v57 = vpop.permute.xlu1 %96  ;;  %v92_v58 = vpop.permute.xlu0 %91 }
  0x93   :  { %v107_v0 = vpop.permute.xlu1 %106  ;;  %v102_v3 = vpop.permute.xlu0 %101 }
  0x97   :  { %v112_v16 = vpop.permute.xlu0 %111 }
  0x98   :  { %v117_v13 = vpop.permute.xlu1 %116 }
  0x9b   :  { %v122_v28 = vpop.permute.xlu0 %121 }
  0x9c   :  { %v127_v25 = vpop.permute.xlu1 %126 }
  0x9f   :  { %v132_v41 = vpop.permute.xlu0 %131 }
  0xa0   :  { %v137_v38 = vpop.permute.xlu1 %136 }
  0xa4   :  { %v147_v50 = vpop.permute.xlu1 %146 }
  0xd9   :  { %v753_v59 = vpop.f32.mrb[0].mxu0 }
  0xda   :  { %v274_v60 = vadd.f32 %v753_v59, %v77_v56  ;;  %v268_v61 = vpop.f32.mrb[1].mxu0 }
  0xdb   :  { %v269_v62 = vadd.f32 %v268_v61, %v72_v54  ;;  %v816_v61 = vld [vmem:[%s1098_s3 + $0x8] sm:$0xff]  }
  0xdc   :  { %v348_v63 = vmax.f32 %v274_v60, 0.0 }
  0xdd   :  { %v347_v1 = vmax.f32 %v269_v62, 0.0  ;;  %v756_v2 = vpop.f32.mrb[2].mxu0  ;;  %v817_v62 = vld [vmem:[%s1098_s3 + $0x10] sm:$0xff]  }
  0xde   :  { %v284_v4 = vadd.f32 %v756_v2, %v87_v55  ;;  %v278_v5 = vpop.f32.mrb[3].mxu0  ;;  %v395_v2 = vpop.permute.xlu1 %394 }
  0xdf   :  { %v279_v6 = vadd.f32 %v278_v5, %v82_v53  ;;  %v363_v7 = vpack.c.bf16 %v348_v63, %v347_v1  ;;  %v142_v53 = vpop.permute.xlu0 %141  ;;  %v818_v63 = vld [vmem:[%s1098_s3 + $0x18] sm:$0xff]  }
  0xe0   :  { %v350_v8 = vmax.f32 %v284_v4, 0.0 }
  0xe1   :  { %v349_v9 = vmax.f32 %v279_v6, 0.0  ;;  %v759_v10 = vpop.f32.mrb[4].mxu0  ;;  %775 = vmatprep.subr.bf16.mxu1 %v363_v7 }
  0xe2   :  { %v294_v11 = vadd.f32 %v759_v10, %v97_v57  ;;  %v288_v12 = vpop.f32.mrb[5].mxu0  ;;  %776 = vmatpush3.bf16.msra.mxu1 %v363_v7  ;;  %v405_v4 = vpop.permute.xlu1 %404 }
  0xe3   :  { %v364_v14 = vpack.c.bf16 %v350_v8, %v349_v9  ;;  %v289_v15 = vadd.f32 %v288_v12, %v92_v58  ;;  %v390_v1 = vpop.permute.xlu0 %389 }
  0xe4   :  { %v352_v17 = vmax.f32 %v294_v11, 0.0 }
  0xe5   :  { %v351_v18 = vmax.f32 %v289_v15, 0.0  ;;  %v762_v19 = vpop.f32.mrb[6].mxu0  ;;  %777 = vmatprep.subr.bf16.mxu1 %v364_v14 }
  0xe6   :  { %v304_v20 = vadd.f32 %v762_v19, %v107_v0  ;;  %v298_v21 = vpop.f32.mrb[7].mxu0  ;;  %778 = vmatpush3.bf16.msra.mxu1 %v364_v14  ;;  %v819_v0 = vld [vmem:[%s1100_s5] sm:$0xff]  }
  0xe7   :  { %v365_v22 = vpack.c.bf16 %v352_v17, %v351_v18  ;;  %v299_v23 = vadd.f32 %v298_v21, %v102_v3  ;;  %807 = vmatprep.mubr.msk.bf16.mxu0 %vm566_vm2, %v819_v0  ;;  %v400_v3 = vpop.permute.xlu0 %399  ;;  %v669_v0 = vlaneseq }
  0xe8   :  { %v354_v24 = vmax.f32 %v304_v20, 0.0 }
  0xe9   :  { %v353_v26 = vmax.f32 %v299_v23, 0.0  ;;  %v765_v27 = vpop.f32.mrb[8].mxu0  ;;  %779 = vmatprep.subr.bf16.mxu1 %v365_v22 }
  0xea   :  { %v314_v29 = vadd.f32 %v765_v27, %v117_v13  ;;  %v308_v30 = vpop.f32.mrb[9].mxu0  ;;  %780 = vmatpush3.bf16.msra.mxu1 %v365_v22  ;;  %v415_v13 = vpop.permute.xlu1 %414 }
  0xeb   :  { %v366_v31 = vpack.c.bf16 %v354_v24, %v353_v26  ;;  %v309_v32 = vadd.f32 %v308_v30, %v112_v16  ;;  %v410_v8 = vpop.permute.xlu0 %409 }
  0xec   :  { %v356_v33 = vmax.f32 %v314_v29, 0.0 }
  0xed   :  { %v355_v34 = vmax.f32 %v309_v32, 0.0  ;;  %v768_v35 = vpop.f32.mrb[10].mxu0  ;;  %781 = vmatprep.subr.bf16.mxu1 %v366_v31 }
  0xee   :  { %v324_v36 = vadd.f32 %v768_v35, %v127_v25  ;;  %v318_v37 = vpop.f32.mrb[11].mxu0  ;;  %782 = vmatpush3.bf16.msra.mxu1 %v366_v31  ;;  %v425_v25 = vpop.permute.xlu1 %424 }
  0xef   :  { %v367_v39 = vpack.c.bf16 %v356_v33, %v355_v34  ;;  %v319_v40 = vadd.f32 %v318_v37, %v122_v28  ;;  %v420_v20 = vpop.permute.xlu0 %419  ;;  %v820_v37 = vld [vmem:[%s1100_s5 + $0x8] sm:$0xff]   ;;  %s846_s5 = smov [#allocation3]  }
  0xf0   :  { %v358_v42 = vmax.f32 %v324_v36, 0.0  ;;  %s681_s19 = sshll.u32 %s846_s5, 4  ;;  %s682_s19 = int_to_ptr.vmem [resolvable:$true] %s681_s19 }
  0xf1   :  { %v357_v43 = vmax.f32 %v319_v40, 0.0  ;;  %v771_v44 = vpop.f32.mrb[12].mxu0  ;;  %783 = vmatprep.subr.bf16.mxu1 %v367_v39  ;;  %s821_s20 = scalar_lea.vmem %s682_s19, 16  ;;  %s825_s21 = scalar_lea.vmem %s682_s19, 32 }
  0xf2   :  { %v334_v45 = vadd.f32 %v771_v44, %v137_v38  ;;  %v328_v46 = vpop.f32.mrb[13].mxu0  ;;  %784 = vmatpush3.bf16.msra.mxu1 %v367_v39  ;;  %v544_v39 = vpop.permute.xlu1 %543  ;;  %p822_p0 = scmp.ne.s32.totalorder %s682_s19, %s821_s20  ;;  %p826_p1 = scmp.lt.s32.totalorder %s682_s19, %s682_s19 }
  0xf3   :  { %v368_v47 = vpack.c.bf16 %v358_v42, %v357_v43  ;;  %v329_v48 = vadd.f32 %v328_v46, %v132_v41  ;;  %v539_v38 = vpop.permute.xlu0 %538  ;;  %p827_p2 = scmp.lt.s32.totalorder %s825_s21, %s821_s20 }
  0xf4   :  { %v360_v49 = vmax.f32 %v334_v45, 0.0 }
  0xf5   :  { %v359_v51 = vmax.f32 %v329_v48, 0.0  ;;  %v774_v52 = vpop.f32.mrb[14].mxu0  ;;  %785 = vmatprep.subr.bf16.mxu1 %v368_v47  ;;  %p828_p3 = por %p827_p2, %p826_p1 }
  0xf6   :  { %v344_v54 = vadd.f32 %v774_v52, %v147_v50  ;;  %v338_v55 = vpop.f32.mrb[15].mxu0  ;;  %786 = vmatpush3.bf16.msra.mxu1 %v368_v47  ;;  %v554_v41 = vpop.permute.xlu1 %553 }
  0xf7   :  { %v369_v56 = vpack.c.bf16 %v360_v49, %v359_v51  ;;  %v339_v57 = vadd.f32 %v338_v55, %v142_v53  ;;  %v549_v40 = vpop.permute.xlu0 %548  ;;  %p829_p4 = pnand %p828_p3, %p822_p0 }
  0xf8   :  { %v362_v58 = vmax.f32 %v344_v54, 0.0 }
  0xf9   :  { %v361_v59 = vmax.f32 %v339_v57, 0.0  ;;  %787 = vmatprep.subr.bf16.mxu1 %v369_v56 }
  0xfa   :  { %788 = vmatpush3.bf16.msra.mxu1 %v369_v56  ;;  %v638_v52 = vpop.permute.xlu1 %637 }
  0xfb   :  { %v370_v60 = vpack.c.bf16 %v362_v58, %v361_v59  ;;  %v633_v47 = vpop.permute.xlu0 %632 }
  0xfd   :  { %789 = vmatprep.subr.bf16.mxu1 %v370_v60 }
  0xfe   :  { %790 = vmatpush3.bf16.msra.mxu1 %v370_v60 }
  0xff   :  { %v643_v58 = vpop.permute.xlu0 %642 }
 0x101   :  { %792 = vmatmul.mubr.bf16.vlgmr.msra.gmra.mrb[0].mxu1 %v816_v61  ;;  %v648_v61 = vpop.permute.xlu1 %647 }
 0x102   :  { %795 = vmatprep.mubr.bf16.mxu1 %v817_v62 }
 0x109   :  { %796 = vmatmul.mubr.bf16.gmra.mrb[4].mxu1 %v818_v63 }
 0x1d4   :  { %v793_v5 = vpop.f32.mrb[0].mxu1 }
 0x1d5   :  { %v494_v6 = vadd.f32 %v793_v5, %v400_v3  ;;  %v485_v7 = vpop.f32.mrb[1].mxu1  ;;  %v670_v3 = vshrl.u32 %v669_v0, 7 }
 0x1d6   :  { %v486_v9 = vadd.f32 %v485_v7, %v390_v1  ;;  %v794_v10 = vpop.f32.mrb[2].mxu1 }
 0x1d7   :  { %v497_v11 = vadd.f32 %v794_v10, %v405_v4  ;;  %v488_v12 = vpop.f32.mrb[3].mxu1  ;;  %v518_v15 = vmax.f32 %v494_v6, 0.0  ;;  %v671_v6 = vsub.s32 0, %v670_v3 }
 0x1d8   :  { %v489_v14 = vadd.f32 %v488_v12, %v395_v2  ;;  %v516_v17 = vmax.f32 %v486_v9, 0.0 }
 0x1d9   :  { %v519_v16 = vmax.f32 %v497_v11, 0.0 }
 0x1da   :  { %v517_v18 = vmax.f32 %v489_v14, 0.0 }
 0x1db   :  { %v525_v19 = vpack.c.bf16 %v519_v16, %v518_v15 }
 0x1dc   :  { %v524_v21 = vpack.c.bf16 %v517_v18, %v516_v17  ;;  %v797_v22 = vpop.f32.mrb[4].mxu1 }
 0x1dd   :  { %v510_v23 = vadd.f32 %v797_v22, %v420_v20  ;;  %v501_v24 = vpop.f32.mrb[5].mxu1 }
 0x1de   :  { %v502_v26 = vadd.f32 %v501_v24, %v410_v8  ;;  %v798_v27 = vpop.f32.mrb[6].mxu1  ;;  %799 = vmatprep.subr.bf16.mxu0 %v524_v21  ;;  %v667_v8 = vpop.permute.xlu0 %666 }
 0x1df   :  { %v513_v28 = vadd.f32 %v798_v27, %v425_v25  ;;  %v504_v29 = vpop.f32.mrb[7].mxu1  ;;  %800 = vmatpush3.bf16.msra.mxu0 %v524_v21  ;;  %v522_v31 = vmax.f32 %v510_v23, 0.0  ;;  %v672_v10 = vrot.slane %v667_v8, %v671_v6 }
 0x1e0   :  { %v505_v30 = vadd.f32 %v504_v29, %v415_v13  ;;  %801 = vmatprep.subr.bf16.mxu0 %v525_v19  ;;  %v520_v33 = vmax.f32 %v502_v26, 0.0 }
 0x1e1   :  { %v523_v32 = vmax.f32 %v513_v28, 0.0 }
 0x1e2   :  { %v521_v34 = vmax.f32 %v505_v30, 0.0 }
 0x1e3   :  { %v527_v35 = vpack.c.bf16 %v523_v32, %v522_v31  ;;  %802 = vmatpush3.bf16.msra.mxu0 %v525_v19 }
 0x1e4   :  { %v526_v36 = vpack.c.bf16 %v521_v34, %v520_v33 }
 0x1e6   :  { %803 = vmatprep.subr.bf16.mxu0 %v526_v36 }
 0x1e7   :  { %804 = vmatpush3.bf16.msra.mxu0 %v526_v36 }
 0x1e8   :  { %805 = vmatprep.subr.bf16.mxu0 %v527_v35 }
 0x1eb   :  { %806 = vmatpush3.bf16.msra.mxu0 %v527_v35 }
 0x1ee   :  { %808 = vmatmul.mubr.msk.bf16.vlgmr.msra.gmra.mrb[16].mxu0 %vm566_vm2, %v820_v37 }
 0x2c1   :  { %v809_v42 = vpop.f32.mrb[16].mxu0 }
 0x2c2   :  { %v607_v43 = vpop.f32.mrb[17].mxu0  ;;  %v616_v44 = vadd.f32 %v809_v42, %v549_v40 }
 0x2c3   :  { %v608_v45 = vadd.f32 %v607_v43, %v539_v38  ;;  %v810_v46 = vpop.f32.mrb[18].mxu0 }
 0x2c4   :  { %v610_v48 = vpop.f32.mrb[19].mxu0  ;;  %v619_v50 = vadd.f32 %v810_v46, %v554_v41  ;;  %v624_v53 = vmax.f32 %v616_v44, 0.0 }
 0x2c5   :  { %v622_v49 = vmax.f32 %v608_v45, 0.0  ;;  %v611_v51 = vadd.f32 %v610_v48, %v544_v39 }
 0x2c6   :  { %v625_v56 = vmax.f32 %v619_v50, 0.0  ;;  %v652_v59 = vmul.f32 %v643_v58, %v624_v53 }
 0x2c7   :  { %v623_v54 = vmax.f32 %v611_v51, 0.0  ;;  %v650_v55 = vmul.f32 %v633_v47, %v622_v49 }
 0x2c8   :  { %v653_v62 = vmul.f32 %v648_v61, %v625_v56 }
 0x2c9   :  { %v651_v57 = vmul.f32 %v638_v52, %v623_v54 }
 0x2cb   :  { %v654_v60 = vadd.f32 %v651_v57, %v650_v55 }
 0x2cd   :  { %v655_v63 = vadd.f32 %v654_v60, %v652_v59 }
 0x2cf   :  { %v656_v1 = vadd.f32 %v655_v63, %v653_v62 }
 0x2d1   :  { %v657_v2 = vrot.slane %v656_v1, 4 }
 0x2d3   :  { %v658_v4 = vadd.f32 %v657_v2, %v656_v1 }
 0x2d5   :  { %v659_v5 = vrot.slane %v658_v4, 2 }
 0x2d7   :  { %v660_v7 = vadd.f32 %v659_v5, %v658_v4 }
 0x2d9   :  { %v661_v9 = vrot.slane %v660_v7, 1 }
 0x2db   :  { %v662_v11 = vadd.f32 %v661_v9, %v660_v7 }
 0x2dd   :  { %v673_v12 = vadd.f32 %v672_v10, %v662_v11 }
 0x2df   :  { %674 = vst [vmem:[#allocation3] sm:$0x1] %v673_v12 }
 0x2e0   :  { %832 = shalt.err (!%p829_p4)
}
 0x2e1   :  { %s833_s24 = scalar_lea.hbm %s1104_s9, 16 }
 0x2e2   :  { %p834_p5 = scmp.ne.s32.totalorder %s1104_s9, %s833_s24  ;;  %p837_p6 = scmp.lt.u32.totalorder %s833_s24, %s1104_s9 }
 0x2e4   :  { %p839_p7 = pnand %p837_p6, %p834_p5 }
 0x2e6   :  { %842 = shalt.err (!%p839_p7)
}
 0x2e7   :  { %684 = dma.vmem_to_hbm [thread:$0]  %s682_s19, 16, %s1104_s9, [#allocation4]  }
 0x2e8   :  { %843 = dma.done.wait [#allocation4], 16  }
 0x2e9   :  { %844 = vsyncadd [#allocation4], 4294967280 }
 0x2ea   :  { %688 = vsyncpa [#allocation4], 1 }

</bundles_post_ra>
